<compile_context>
chip_gen: v6e
topology: v6e:2x2x1
jax: 0.10.0
libtpu: 0.0.40
codegen_flags: <defaults>
</compile_context>

<pallas_src>
import functools
import math

import jax
import jax.numpy as jnp
from jax.experimental import pallas as pl
from jax.experimental.pallas import tpu as pltpu

OCC_THRESHOLD = 0.5
_LANES = 128
_SUBLANES = 8


def _ray_associator_kernel(occ_ref, out_ref, *, n_points, n_parts, occ_threshold, chunk):
    # occ_ref: (P*N, tmo, 128) float -- row p*N+n holds part n of point p; rays are
    #          dense on (sublane, lane), so all reductions are elementwise VPU ops.
    # out_ref: (tmo, 128) int32 packed as (ray_occupied << 16) | part_index.
    tmo = out_ref.shape[0]
    n_chunks = tmo // chunk

    def process_chunk(s):
        ray_in = None   # (chunk, 128) bool : any occupied point seen so far
        assoc = None    # (chunk, 128) int32: part idx of first occupied point (or pt 0)
        for p in range(n_points):
            base = p * n_parts
            # Running (max, argmax) over parts; strict '>' keeps the first occurrence
            # on ties, matching torch.max / jnp.argmax.
            run_max = occ_ref[base, pl.ds(s, chunk), :].astype(jnp.float32)
            run_idx = jnp.zeros((chunk, _LANES), jnp.int32)
            for n in range(1, n_parts):
                v = occ_ref[base + n, pl.ds(s, chunk), :].astype(jnp.float32)
                gt = v > run_max
                run_idx = jnp.where(gt, jnp.int32(n), run_idx)
                run_max = jnp.maximum(run_max, v)
            pt_in = run_max >= occ_threshold
            if p == 0:
                # torch argmax over an all-False points_in row returns 0, so the default
                # association is the part argmax of point 0.
                assoc = run_idx
                ray_in = pt_in
            else:
                first_hit = jnp.logical_and(pt_in, jnp.logical_not(ray_in))
                assoc = jnp.where(first_hit, run_idx, assoc)
                ray_in = jnp.logical_or(ray_in, pt_in)
        out_ref[pl.ds(s, chunk), :] = (ray_in.astype(jnp.int32) << 16) | assoc

    if n_chunks <= 8:
        # Static unroll: fully LLO-visible, no loop overhead.
        for c in range(n_chunks):
            process_chunk(c * chunk)
    else:
        def body(c, carry):
            process_chunk(pl.multiple_of(c * chunk, chunk))
            return carry
        jax.lax.fori_loop(0, n_chunks, body, 0)


def _plan(M, PN, itemsize, tile_bytes):
    """Pick (num_tiles, tmo, chunk, M_pad, vmem_limit) for M rays and PN values/ray."""
    Mo = pl.cdiv(M, _LANES)                       # 128-ray lane-rows needed
    row_bytes = PN * _LANES * itemsize            # HBM bytes per lane-row

    # Target sublane-rows per tile (~tile_bytes of input, double-buffered by Pallas).
    tmo_target = max(_SUBLANES, min(2048, tile_bytes // row_bytes))
    tmo_target = max(_SUBLANES, (tmo_target // _SUBLANES) * _SUBLANES)
    # Hard cap: double-buffered input tile <= ~24 MiB (v7x has only 64 MiB VMEM).
    max_pair_bytes = 24 * 1024 * 1024
    if 2 * tmo_target * row_bytes > max_pair_bytes:
        tmo_target = max(_SUBLANES,
                         (max_pair_bytes // (2 * row_bytes) // _SUBLANES) * _SUBLANES)

    num_tiles = pl.cdiv(Mo, tmo_target)
    if num_tiles == 1 and Mo > _SUBLANES:
        num_tiles = 2   # give both v7x TensorCores a tile; overlap DMA with compute

    # Re-derive tmo from num_tiles so padding stays below 8 lane-rows per tile.
    tmo = _SUBLANES * pl.cdiv(pl.cdiv(Mo, num_tiles), _SUBLANES)

    # Chunk size for vreg-resident compute inside the kernel (~6 temps * chunk/8 vregs).
    if tmo % 32 == 0:
        chunk = 32
    elif tmo % 16 == 0:
        chunk = 16
    else:
        chunk = 8

    M_pad = num_tiles * tmo * _LANES
    in_tile = PN * tmo * _LANES * itemsize
    out_tile = tmo * _LANES * 4
    vmem_limit = int(min(max(2 * (in_tile + out_tile) + (2 << 20), 16 << 20), 48 << 20))
    return num_tiles, tmo, chunk, M_pad, vmem_limit


def _launch(occ_t, *, n_points, n_parts, occ_threshold, num_tiles, tmo, chunk,
            vmem_limit, itemsize):
    """occ_t: [P*N, Mo_pad, 128] -> packed int32 [Mo_pad*128]."""
    PN, Mo_pad, _ = occ_t.shape
    M_pad = Mo_pad * _LANES
    kernel = functools.partial(_ray_associator_kernel, n_points=n_points,
                               n_parts=n_parts, occ_threshold=occ_threshold,
                               chunk=chunk)
    packed = pl.pallas_call(
        kernel,
        out_shape=jax.ShapeDtypeStruct((Mo_pad, _LANES), jnp.int32),
        grid=(num_tiles,),
        in_specs=[pl.BlockSpec((PN, tmo, _LANES), lambda i: (0, i, 0))],
        out_specs=pl.BlockSpec((tmo, _LANES), lambda i: (i, 0)),
        compiler_params=pltpu.CompilerParams(
            dimension_semantics=("parallel",),
            vmem_limit_bytes=vmem_limit),
        cost_estimate=pl.CostEstimate(
            flops=3 * M_pad * PN,
            transcendentals=0,
            bytes_accessed=M_pad * PN * itemsize + M_pad * 4),
    )(occ_t)
    return packed.reshape(M_pad)


def _unpack(packed_flat, M):
    flat = packed_flat[:M]
    positive_rays = flat >= (1 << 16)       # bit 16 = ray occupied
    ray_associations = flat & 0xFFFF        # low 16 bits = part index
    return positive_rays, ray_associations


def ray_associator(occ, *, occ_threshold=OCC_THRESHOLD, tile_bytes=4 * 1024 * 1024):
    """occ: [..., P, N] float -> (positive_rays bool [...], ray_associations int32 [...])."""
    *lead, P, N = occ.shape
    lead = tuple(lead)
    assert N < (1 << 16), "part index must fit in 16 bits for the packed output"
    PN = P * N
    M = math.prod(lead) if lead else 1
    itemsize = jnp.dtype(occ.dtype).itemsize
    num_tiles, tmo, chunk, M_pad, vmem_limit = _plan(M, PN, itemsize, tile_bytes)

    # --- rays-on-lanes relayout: [..., P, N] -> [P*N, Mo_pad, 128] -------------------
    # XLA fuses pad + transpose into one copy: one extra HBM read+write pass of occ.
    # Padded rays are sliced off after the kernel, so the pad value is irrelevant.
    occ2 = occ.reshape(M, PN)
    if M_pad != M:
        occ2 = jnp.pad(occ2, ((0, M_pad - M), (0, 0)))
    occ_t = occ2.T.reshape(PN, M_pad // _LANES, _LANES)

    packed = _launch(occ_t, n_points=P, n_parts=N, occ_threshold=occ_threshold,
                     num_tiles=num_tiles, tmo=tmo, chunk=chunk,
                     vmem_limit=vmem_limit, itemsize=itemsize)
    pos, assoc = _unpack(packed, M)
    # TODO(synk): torch's .squeeze() also drops size-1 leading dims and returns int64;
    # we keep the leading shape and int32 associations.
    return pos.reshape(lead), assoc.reshape(lead)


def ray_associator_part_major(occ_pm, *, occ_threshold=OCC_THRESHOLD,
                              tile_bytes=4 * 1024 * 1024):
    """Transpose-free fast path: occ_pm is part-major [P, N, M] (rays minor)."""
    P, N, M = occ_pm.shape
    assert N < (1 << 16), "part index must fit in 16 bits for the packed output"
    PN = P * N
    itemsize = jnp.dtype(occ_pm.dtype).itemsize
    num_tiles, tmo, chunk, M_pad, vmem_limit = _plan(M, PN, itemsize, tile_bytes)

    occ2 = occ_pm.reshape(PN, M)
    if M_pad != M:                           # pad only; no transpose pass
        occ2 = jnp.pad(occ2, ((0, 0), (0, M_pad - M)))
    occ_t = occ2.reshape(PN, M_pad // _LANES, _LANES)   # free reshape

    packed = _launch(occ_t, n_points=P, n_parts=N, occ_threshold=occ_threshold,
                     num_tiles=num_tiles, tmo=tmo, chunk=chunk,
                     vmem_limit=vmem_limit, itemsize=itemsize)
    return _unpack(packed, M)                # shapes [M], [M]


def _reference(occ, occ_threshold=OCC_THRESHOLD):
    # Pure-JAX reference mirroring the PyTorch forward (first-occurrence argmax).
    max_occ = jnp.max(occ, axis=-1)
    part_idx = jnp.argmax(occ, axis=-1).astype(jnp.int32)
    points_in = max_occ >= occ_threshold
    positive_rays = jnp.any(points_in, axis=-1)
    positive_pt_idx = jnp.argmax(points_in, axis=-1)
    ray_assoc = jnp.take_along_axis(part_idx, positive_pt_idx[..., None],
                                    axis=-1)[..., 0]
    return positive_rays, ray_assoc


if __name__ == "__main__":
    key = jax.random.PRNGKey(0)
    k1, k2 = jax.random.split(key)

    # Case 1: small problem, single grid step.
    B, R, P, N = 2, 16, 8, 4            # batch, rays, points-per-ray, parts
    occ1 = jax.random.uniform(k1, (B, R, P, N), dtype=jnp.float32)
    pos1, assoc1 = ray_associator(occ1)
    jax.block_until_ready((pos1, assoc1))
    ref_pos1, ref_assoc1 = _reference(occ1)
    assert bool(jnp.all(pos1 == ref_pos1)), "positive_rays mismatch (case 1)"
    assert bool(jnp.all(assoc1 == ref_assoc1)), "ray_associations mismatch (case 1)"

    # Case 2: multi-tile grid (>= 2 steps), ray-count padding, and the transpose-free
    # part-major fast path.
    B2, R2, P2, N2 = 4, 600, 6, 5
    occ2 = jax.random.uniform(k2, (B2, R2, P2, N2), dtype=jnp.float32)
    pos2, assoc2 = ray_associator(occ2)
    occ2_pm = jnp.transpose(occ2.reshape(B2 * R2, P2, N2), (1, 2, 0))  # [P, N, M]
    pos2b, assoc2b = ray_associator_part_major(occ2_pm)
    jax.block_until_ready((pos2, assoc2, pos2b, assoc2b))
    ref_pos2, ref_assoc2 = _reference(occ2)
    assert bool(jnp.all(pos2 == ref_pos2)), "positive_rays mismatch (case 2)"
    assert bool(jnp.all(assoc2 == ref_assoc2)), "ray_associations mismatch (case 2)"
    assert bool(jnp.all(pos2b == ref_pos2.reshape(-1))), "part-major pos mismatch"
    assert bool(jnp.all(assoc2b == ref_assoc2.reshape(-1))), "part-major assoc mismatch"

    print("KERNEL_OK")
</pallas_src>

<mosaic_0001>
module attributes {stable_mosaic.version = 11 : i64} {
  func.func @_ray_associator_kernel(%arg0: i32, %arg1: memref<32x8x128xf32, #tpu.memory_space<vmem>>, %arg2: memref<8x128xi32, #tpu.memory_space<vmem>>) attributes {dimension_semantics = [#tpu.dimension_semantics<parallel>], iteration_bounds = array<i64: 1>, scalar_prefetch = 0 : i64, scratch_operands = 0 : i64, tpu.core_type = #tpu.core_type<tc>, window_params = [{transform_indices = @transform_0, window_bounds = array<i64: 32, 8, 128>}, {transform_indices = @transform_1, window_bounds = array<i64: 8, 128>}]} {
    %c0 = arith.constant 0 : index
    %c0_0 = arith.constant 0 : index
    %c0_1 = arith.constant 0 : index
    %0 = vector.load %arg1[%c0, %c0_0, %c0_1] : memref<32x8x128xf32, #tpu.memory_space<vmem>>, vector<1x8x128xf32>
    %1 = vector.shape_cast %0 : vector<1x8x128xf32> to vector<8x128xf32>
    %c0_i32 = arith.constant 0 : i32
    %2 = vector.broadcast %c0_i32 : i32 to vector<8x128xi32>
    %c1 = arith.constant 1 : index
    %c0_2 = arith.constant 0 : index
    %c0_3 = arith.constant 0 : index
    %3 = vector.load %arg1[%c1, %c0_2, %c0_3] : memref<32x8x128xf32, #tpu.memory_space<vmem>>, vector<1x8x128xf32>
    %4 = vector.shape_cast %3 : vector<1x8x128xf32> to vector<8x128xf32>
    %5 = arith.cmpf ogt, %4, %1 : vector<8x128xf32>
    %c1_i32 = arith.constant 1 : i32
    %6 = vector.broadcast %c1_i32 : i32 to vector<8x128xi32>
    %7 = arith.select %5, %6, %2 : vector<8x128xi1>, vector<8x128xi32>
    %8 = arith.maximumf %1, %4 : vector<8x128xf32>
    %c2 = arith.constant 2 : index
    %c0_4 = arith.constant 0 : index
    %c0_5 = arith.constant 0 : index
    %9 = vector.load %arg1[%c2, %c0_4, %c0_5] : memref<32x8x128xf32, #tpu.memory_space<vmem>>, vector<1x8x128xf32>
    %10 = vector.shape_cast %9 : vector<1x8x128xf32> to vector<8x128xf32>
    %11 = arith.cmpf ogt, %10, %8 : vector<8x128xf32>
    %c2_i32 = arith.constant 2 : i32
    %12 = vector.broadcast %c2_i32 : i32 to vector<8x128xi32>
    %13 = arith.select %11, %12, %7 : vector<8x128xi1>, vector<8x128xi32>
    %14 = arith.maximumf %8, %10 : vector<8x128xf32>
    %c3 = arith.constant 3 : index
    %c0_6 = arith.constant 0 : index
    %c0_7 = arith.constant 0 : index
    %15 = vector.load %arg1[%c3, %c0_6, %c0_7] : memref<32x8x128xf32, #tpu.memory_space<vmem>>, vector<1x8x128xf32>
    %16 = vector.shape_cast %15 : vector<1x8x128xf32> to vector<8x128xf32>
    %17 = arith.cmpf ogt, %16, %14 : vector<8x128xf32>
    %c3_i32 = arith.constant 3 : i32
    %18 = vector.broadcast %c3_i32 : i32 to vector<8x128xi32>
    %19 = arith.select %17, %18, %13 : vector<8x128xi1>, vector<8x128xi32>
    %20 = arith.maximumf %14, %16 : vector<8x128xf32>
    %cst = arith.constant 5.000000e-01 : f32
    %21 = vector.broadcast %cst : f32 to vector<8x128xf32>
    %22 = arith.cmpf oge, %20, %21 : vector<8x128xf32>
    %c4 = arith.constant 4 : index
    %c0_8 = arith.constant 0 : index
    %c0_9 = arith.constant 0 : index
    %23 = vector.load %arg1[%c4, %c0_8, %c0_9] : memref<32x8x128xf32, #tpu.memory_space<vmem>>, vector<1x8x128xf32>
    %24 = vector.shape_cast %23 : vector<1x8x128xf32> to vector<8x128xf32>
    %c0_i32_10 = arith.constant 0 : i32
    %25 = vector.broadcast %c0_i32_10 : i32 to vector<8x128xi32>
    %c5 = arith.constant 5 : index
    %c0_11 = arith.constant 0 : index
    %c0_12 = arith.constant 0 : index
    %26 = vector.load %arg1[%c5, %c0_11, %c0_12] : memref<32x8x128xf32, #tpu.memory_space<vmem>>, vector<1x8x128xf32>
    %27 = vector.shape_cast %26 : vector<1x8x128xf32> to vector<8x128xf32>
    %28 = arith.cmpf ogt, %27, %24 : vector<8x128xf32>
    %c1_i32_13 = arith.constant 1 : i32
    %29 = vector.broadcast %c1_i32_13 : i32 to vector<8x128xi32>
    %30 = arith.select %28, %29, %25 : vector<8x128xi1>, vector<8x128xi32>
    %31 = arith.maximumf %24, %27 : vector<8x128xf32>
    %c6 = arith.constant 6 : index
    %c0_14 = arith.constant 0 : index
    %c0_15 = arith.constant 0 : index
    %32 = vector.load %arg1[%c6, %c0_14, %c0_15] : memref<32x8x128xf32, #tpu.memory_space<vmem>>, vector<1x8x128xf32>
    %33 = vector.shape_cast %32 : vector<1x8x128xf32> to vector<8x128xf32>
    %34 = arith.cmpf ogt, %33, %31 : vector<8x128xf32>
    %c2_i32_16 = arith.constant 2 : i32
    %35 = vector.broadcast %c2_i32_16 : i32 to vector<8x128xi32>
    %36 = arith.select %34, %35, %30 : vector<8x128xi1>, vector<8x128xi32>
    %37 = arith.maximumf %31, %33 : vector<8x128xf32>
    %c7 = arith.constant 7 : index
    %c0_17 = arith.constant 0 : index
    %c0_18 = arith.constant 0 : index
    %38 = vector.load %arg1[%c7, %c0_17, %c0_18] : memref<32x8x128xf32, #tpu.memory_space<vmem>>, vector<1x8x128xf32>
    %39 = vector.shape_cast %38 : vector<1x8x128xf32> to vector<8x128xf32>
    %40 = arith.cmpf ogt, %39, %37 : vector<8x128xf32>
    %c3_i32_19 = arith.constant 3 : i32
    %41 = vector.broadcast %c3_i32_19 : i32 to vector<8x128xi32>
    %42 = arith.select %40, %41, %36 : vector<8x128xi1>, vector<8x128xi32>
    %43 = arith.maximumf %37, %39 : vector<8x128xf32>
    %cst_20 = arith.constant 5.000000e-01 : f32
    %44 = vector.broadcast %cst_20 : f32 to vector<8x128xf32>
    %45 = arith.cmpf oge, %43, %44 : vector<8x128xf32>
    %cst_21 = arith.constant dense<true> : vector<8x128xi1>
    %46 = arith.xori %22, %cst_21 : vector<8x128xi1>
    %47 = arith.andi %45, %46 : vector<8x128xi1>
    %48 = arith.select %47, %42, %19 : vector<8x128xi1>, vector<8x128xi32>
    %49 = arith.ori %22, %45 : vector<8x128xi1>
    %c8 = arith.constant 8 : index
    %c0_22 = arith.constant 0 : index
    %c0_23 = arith.constant 0 : index
    %50 = vector.load %arg1[%c8, %c0_22, %c0_23] : memref<32x8x128xf32, #tpu.memory_space<vmem>>, vector<1x8x128xf32>
    %51 = vector.shape_cast %50 : vector<1x8x128xf32> to vector<8x128xf32>
    %c0_i32_24 = arith.constant 0 : i32
    %52 = vector.broadcast %c0_i32_24 : i32 to vector<8x128xi32>
    %c9 = arith.constant 9 : index
    %c0_25 = arith.constant 0 : index
    %c0_26 = arith.constant 0 : index
    %53 = vector.load %arg1[%c9, %c0_25, %c0_26] : memref<32x8x128xf32, #tpu.memory_space<vmem>>, vector<1x8x128xf32>
    %54 = vector.shape_cast %53 : vector<1x8x128xf32> to vector<8x128xf32>
    %55 = arith.cmpf ogt, %54, %51 : vector<8x128xf32>
    %c1_i32_27 = arith.constant 1 : i32
    %56 = vector.broadcast %c1_i32_27 : i32 to vector<8x128xi32>
    %57 = arith.select %55, %56, %52 : vector<8x128xi1>, vector<8x128xi32>
    %58 = arith.maximumf %51, %54 : vector<8x128xf32>
    %c10 = arith.constant 10 : index
    %c0_28 = arith.constant 0 : index
    %c0_29 = arith.constant 0 : index
    %59 = vector.load %arg1[%c10, %c0_28, %c0_29] : memref<32x8x128xf32, #tpu.memory_space<vmem>>, vector<1x8x128xf32>
    %60 = vector.shape_cast %59 : vector<1x8x128xf32> to vector<8x128xf32>
    %61 = arith.cmpf ogt, %60, %58 : vector<8x128xf32>
    %c2_i32_30 = arith.constant 2 : i32
    %62 = vector.broadcast %c2_i32_30 : i32 to vector<8x128xi32>
    %63 = arith.select %61, %62, %57 : vector<8x128xi1>, vector<8x128xi32>
    %64 = arith.maximumf %58, %60 : vector<8x128xf32>
    %c11 = arith.constant 11 : index
    %c0_31 = arith.constant 0 : index
    %c0_32 = arith.constant 0 : index
    %65 = vector.load %arg1[%c11, %c0_31, %c0_32] : memref<32x8x128xf32, #tpu.memory_space<vmem>>, vector<1x8x128xf32>
    %66 = vector.shape_cast %65 : vector<1x8x128xf32> to vector<8x128xf32>
    %67 = arith.cmpf ogt, %66, %64 : vector<8x128xf32>
    %c3_i32_33 = arith.constant 3 : i32
    %68 = vector.broadcast %c3_i32_33 : i32 to vector<8x128xi32>
    %69 = arith.select %67, %68, %63 : vector<8x128xi1>, vector<8x128xi32>
    %70 = arith.maximumf %64, %66 : vector<8x128xf32>
    %cst_34 = arith.constant 5.000000e-01 : f32
    %71 = vector.broadcast %cst_34 : f32 to vector<8x128xf32>
    %72 = arith.cmpf oge, %70, %71 : vector<8x128xf32>
    %cst_35 = arith.constant dense<true> : vector<8x128xi1>
    %73 = arith.xori %49, %cst_35 : vector<8x128xi1>
    %74 = arith.andi %72, %73 : vector<8x128xi1>
    %75 = arith.select %74, %69, %48 : vector<8x128xi1>, vector<8x128xi32>
    %76 = arith.ori %49, %72 : vector<8x128xi1>
    %c12 = arith.constant 12 : index
    %c0_36 = arith.constant 0 : index
    %c0_37 = arith.constant 0 : index
    %77 = vector.load %arg1[%c12, %c0_36, %c0_37] : memref<32x8x128xf32, #tpu.memory_space<vmem>>, vector<1x8x128xf32>
    %78 = vector.shape_cast %77 : vector<1x8x128xf32> to vector<8x128xf32>
    %c0_i32_38 = arith.constant 0 : i32
    %79 = vector.broadcast %c0_i32_38 : i32 to vector<8x128xi32>
    %c13 = arith.constant 13 : index
    %c0_39 = arith.constant 0 : index
    %c0_40 = arith.constant 0 : index
    %80 = vector.load %arg1[%c13, %c0_39, %c0_40] : memref<32x8x128xf32, #tpu.memory_space<vmem>>, vector<1x8x128xf32>
    %81 = vector.shape_cast %80 : vector<1x8x128xf32> to vector<8x128xf32>
    %82 = arith.cmpf ogt, %81, %78 : vector<8x128xf32>
    %c1_i32_41 = arith.constant 1 : i32
    %83 = vector.broadcast %c1_i32_41 : i32 to vector<8x128xi32>
    %84 = arith.select %82, %83, %79 : vector<8x128xi1>, vector<8x128xi32>
    %85 = arith.maximumf %78, %81 : vector<8x128xf32>
    %c14 = arith.constant 14 : index
    %c0_42 = arith.constant 0 : index
    %c0_43 = arith.constant 0 : index
    %86 = vector.load %arg1[%c14, %c0_42, %c0_43] : memref<32x8x128xf32, #tpu.memory_space<vmem>>, vector<1x8x128xf32>
    %87 = vector.shape_cast %86 : vector<1x8x128xf32> to vector<8x128xf32>
    %88 = arith.cmpf ogt, %87, %85 : vector<8x128xf32>
    %c2_i32_44 = arith.constant 2 : i32
    %89 = vector.broadcast %c2_i32_44 : i32 to vector<8x128xi32>
    %90 = arith.select %88, %89, %84 : vector<8x128xi1>, vector<8x128xi32>
    %91 = arith.maximumf %85, %87 : vector<8x128xf32>
    %c15 = arith.constant 15 : index
    %c0_45 = arith.constant 0 : index
    %c0_46 = arith.constant 0 : index
    %92 = vector.load %arg1[%c15, %c0_45, %c0_46] : memref<32x8x128xf32, #tpu.memory_space<vmem>>, vector<1x8x128xf32>
    %93 = vector.shape_cast %92 : vector<1x8x128xf32> to vector<8x128xf32>
    %94 = arith.cmpf ogt, %93, %91 : vector<8x128xf32>
    %c3_i32_47 = arith.constant 3 : i32
    %95 = vector.broadcast %c3_i32_47 : i32 to vector<8x128xi32>
    %96 = arith.select %94, %95, %90 : vector<8x128xi1>, vector<8x128xi32>
    %97 = arith.maximumf %91, %93 : vector<8x128xf32>
    %cst_48 = arith.constant 5.000000e-01 : f32
    %98 = vector.broadcast %cst_48 : f32 to vector<8x128xf32>
    %99 = arith.cmpf oge, %97, %98 : vector<8x128xf32>
    %cst_49 = arith.constant dense<true> : vector<8x128xi1>
    %100 = arith.xori %76, %cst_49 : vector<8x128xi1>
    %101 = arith.andi %99, %100 : vector<8x128xi1>
    %102 = arith.select %101, %96, %75 : vector<8x128xi1>, vector<8x128xi32>
    %103 = arith.ori %76, %99 : vector<8x128xi1>
    %c16 = arith.constant 16 : index
    %c0_50 = arith.constant 0 : index
    %c0_51 = arith.constant 0 : index
    %104 = vector.load %arg1[%c16, %c0_50, %c0_51] : memref<32x8x128xf32, #tpu.memory_space<vmem>>, vector<1x8x128xf32>
    %105 = vector.shape_cast %104 : vector<1x8x128xf32> to vector<8x128xf32>
    %c0_i32_52 = arith.constant 0 : i32
    %106 = vector.broadcast %c0_i32_52 : i32 to vector<8x128xi32>
    %c17 = arith.constant 17 : index
    %c0_53 = arith.constant 0 : index
    %c0_54 = arith.constant 0 : index
    %107 = vector.load %arg1[%c17, %c0_53, %c0_54] : memref<32x8x128xf32, #tpu.memory_space<vmem>>, vector<1x8x128xf32>
    %108 = vector.shape_cast %107 : vector<1x8x128xf32> to vector<8x128xf32>
    %109 = arith.cmpf ogt, %108, %105 : vector<8x128xf32>
    %c1_i32_55 = arith.constant 1 : i32
    %110 = vector.broadcast %c1_i32_55 : i32 to vector<8x128xi32>
    %111 = arith.select %109, %110, %106 : vector<8x128xi1>, vector<8x128xi32>
    %112 = arith.maximumf %105, %108 : vector<8x128xf32>
    %c18 = arith.constant 18 : index
    %c0_56 = arith.constant 0 : index
    %c0_57 = arith.constant 0 : index
    %113 = vector.load %arg1[%c18, %c0_56, %c0_57] : memref<32x8x128xf32, #tpu.memory_space<vmem>>, vector<1x8x128xf32>
    %114 = vector.shape_cast %113 : vector<1x8x128xf32> to vector<8x128xf32>
    %115 = arith.cmpf ogt, %114, %112 : vector<8x128xf32>
    %c2_i32_58 = arith.constant 2 : i32
    %116 = vector.broadcast %c2_i32_58 : i32 to vector<8x128xi32>
    %117 = arith.select %115, %116, %111 : vector<8x128xi1>, vector<8x128xi32>
    %118 = arith.maximumf %112, %114 : vector<8x128xf32>
    %c19 = arith.constant 19 : index
    %c0_59 = arith.constant 0 : index
    %c0_60 = arith.constant 0 : index
    %119 = vector.load %arg1[%c19, %c0_59, %c0_60] : memref<32x8x128xf32, #tpu.memory_space<vmem>>, vector<1x8x128xf32>
    %120 = vector.shape_cast %119 : vector<1x8x128xf32> to vector<8x128xf32>
    %121 = arith.cmpf ogt, %120, %118 : vector<8x128xf32>
    %c3_i32_61 = arith.constant 3 : i32
    %122 = vector.broadcast %c3_i32_61 : i32 to vector<8x128xi32>
    %123 = arith.select %121, %122, %117 : vector<8x128xi1>, vector<8x128xi32>
    %124 = arith.maximumf %118, %120 : vector<8x128xf32>
    %cst_62 = arith.constant 5.000000e-01 : f32
    %125 = vector.broadcast %cst_62 : f32 to vector<8x128xf32>
    %126 = arith.cmpf oge, %124, %125 : vector<8x128xf32>
    %cst_63 = arith.constant dense<true> : vector<8x128xi1>
    %127 = arith.xori %103, %cst_63 : vector<8x128xi1>
    %128 = arith.andi %126, %127 : vector<8x128xi1>
    %129 = arith.select %128, %123, %102 : vector<8x128xi1>, vector<8x128xi32>
    %130 = arith.ori %103, %126 : vector<8x128xi1>
    %c20 = arith.constant 20 : index
    %c0_64 = arith.constant 0 : index
    %c0_65 = arith.constant 0 : index
    %131 = vector.load %arg1[%c20, %c0_64, %c0_65] : memref<32x8x128xf32, #tpu.memory_space<vmem>>, vector<1x8x128xf32>
    %132 = vector.shape_cast %131 : vector<1x8x128xf32> to vector<8x128xf32>
    %c0_i32_66 = arith.constant 0 : i32
    %133 = vector.broadcast %c0_i32_66 : i32 to vector<8x128xi32>
    %c21 = arith.constant 21 : index
    %c0_67 = arith.constant 0 : index
    %c0_68 = arith.constant 0 : index
    %134 = vector.load %arg1[%c21, %c0_67, %c0_68] : memref<32x8x128xf32, #tpu.memory_space<vmem>>, vector<1x8x128xf32>
    %135 = vector.shape_cast %134 : vector<1x8x128xf32> to vector<8x128xf32>
    %136 = arith.cmpf ogt, %135, %132 : vector<8x128xf32>
    %c1_i32_69 = arith.constant 1 : i32
    %137 = vector.broadcast %c1_i32_69 : i32 to vector<8x128xi32>
    %138 = arith.select %136, %137, %133 : vector<8x128xi1>, vector<8x128xi32>
    %139 = arith.maximumf %132, %135 : vector<8x128xf32>
    %c22 = arith.constant 22 : index
    %c0_70 = arith.constant 0 : index
    %c0_71 = arith.constant 0 : index
    %140 = vector.load %arg1[%c22, %c0_70, %c0_71] : memref<32x8x128xf32, #tpu.memory_space<vmem>>, vector<1x8x128xf32>
    %141 = vector.shape_cast %140 : vector<1x8x128xf32> to vector<8x128xf32>
    %142 = arith.cmpf ogt, %141, %139 : vector<8x128xf32>
    %c2_i32_72 = arith.constant 2 : i32
    %143 = vector.broadcast %c2_i32_72 : i32 to vector<8x128xi32>
    %144 = arith.select %142, %143, %138 : vector<8x128xi1>, vector<8x128xi32>
    %145 = arith.maximumf %139, %141 : vector<8x128xf32>
    %c23 = arith.constant 23 : index
    %c0_73 = arith.constant 0 : index
    %c0_74 = arith.constant 0 : index
    %146 = vector.load %arg1[%c23, %c0_73, %c0_74] : memref<32x8x128xf32, #tpu.memory_space<vmem>>, vector<1x8x128xf32>
    %147 = vector.shape_cast %146 : vector<1x8x128xf32> to vector<8x128xf32>
    %148 = arith.cmpf ogt, %147, %145 : vector<8x128xf32>
    %c3_i32_75 = arith.constant 3 : i32
    %149 = vector.broadcast %c3_i32_75 : i32 to vector<8x128xi32>
    %150 = arith.select %148, %149, %144 : vector<8x128xi1>, vector<8x128xi32>
    %151 = arith.maximumf %145, %147 : vector<8x128xf32>
    %cst_76 = arith.constant 5.000000e-01 : f32
    %152 = vector.broadcast %cst_76 : f32 to vector<8x128xf32>
    %153 = arith.cmpf oge, %151, %152 : vector<8x128xf32>
    %cst_77 = arith.constant dense<true> : vector<8x128xi1>
    %154 = arith.xori %130, %cst_77 : vector<8x128xi1>
    %155 = arith.andi %153, %154 : vector<8x128xi1>
    %156 = arith.select %155, %150, %129 : vector<8x128xi1>, vector<8x128xi32>
    %157 = arith.ori %130, %153 : vector<8x128xi1>
    %c24 = arith.constant 24 : index
    %c0_78 = arith.constant 0 : index
    %c0_79 = arith.constant 0 : index
    %158 = vector.load %arg1[%c24, %c0_78, %c0_79] : memref<32x8x128xf32, #tpu.memory_space<vmem>>, vector<1x8x128xf32>
    %159 = vector.shape_cast %158 : vector<1x8x128xf32> to vector<8x128xf32>
    %c0_i32_80 = arith.constant 0 : i32
    %160 = vector.broadcast %c0_i32_80 : i32 to vector<8x128xi32>
    %c25 = arith.constant 25 : index
    %c0_81 = arith.constant 0 : index
    %c0_82 = arith.constant 0 : index
    %161 = vector.load %arg1[%c25, %c0_81, %c0_82] : memref<32x8x128xf32, #tpu.memory_space<vmem>>, vector<1x8x128xf32>
    %162 = vector.shape_cast %161 : vector<1x8x128xf32> to vector<8x128xf32>
    %163 = arith.cmpf ogt, %162, %159 : vector<8x128xf32>
    %c1_i32_83 = arith.constant 1 : i32
    %164 = vector.broadcast %c1_i32_83 : i32 to vector<8x128xi32>
    %165 = arith.select %163, %164, %160 : vector<8x128xi1>, vector<8x128xi32>
    %166 = arith.maximumf %159, %162 : vector<8x128xf32>
    %c26 = arith.constant 26 : index
    %c0_84 = arith.constant 0 : index
    %c0_85 = arith.constant 0 : index
    %167 = vector.load %arg1[%c26, %c0_84, %c0_85] : memref<32x8x128xf32, #tpu.memory_space<vmem>>, vector<1x8x128xf32>
    %168 = vector.shape_cast %167 : vector<1x8x128xf32> to vector<8x128xf32>
    %169 = arith.cmpf ogt, %168, %166 : vector<8x128xf32>
    %c2_i32_86 = arith.constant 2 : i32
    %170 = vector.broadcast %c2_i32_86 : i32 to vector<8x128xi32>
    %171 = arith.select %169, %170, %165 : vector<8x128xi1>, vector<8x128xi32>
    %172 = arith.maximumf %166, %168 : vector<8x128xf32>
    %c27 = arith.constant 27 : index
    %c0_87 = arith.constant 0 : index
    %c0_88 = arith.constant 0 : index
    %173 = vector.load %arg1[%c27, %c0_87, %c0_88] : memref<32x8x128xf32, #tpu.memory_space<vmem>>, vector<1x8x128xf32>
    %174 = vector.shape_cast %173 : vector<1x8x128xf32> to vector<8x128xf32>
    %175 = arith.cmpf ogt, %174, %172 : vector<8x128xf32>
    %c3_i32_89 = arith.constant 3 : i32
    %176 = vector.broadcast %c3_i32_89 : i32 to vector<8x128xi32>
    %177 = arith.select %175, %176, %171 : vector<8x128xi1>, vector<8x128xi32>
    %178 = arith.maximumf %172, %174 : vector<8x128xf32>
    %cst_90 = arith.constant 5.000000e-01 : f32
    %179 = vector.broadcast %cst_90 : f32 to vector<8x128xf32>
    %180 = arith.cmpf oge, %178, %179 : vector<8x128xf32>
    %cst_91 = arith.constant dense<true> : vector<8x128xi1>
    %181 = arith.xori %157, %cst_91 : vector<8x128xi1>
    %182 = arith.andi %180, %181 : vector<8x128xi1>
    %183 = arith.select %182, %177, %156 : vector<8x128xi1>, vector<8x128xi32>
    %184 = arith.ori %157, %180 : vector<8x128xi1>
    %c28 = arith.constant 28 : index
    %c0_92 = arith.constant 0 : index
    %c0_93 = arith.constant 0 : index
    %185 = vector.load %arg1[%c28, %c0_92, %c0_93] : memref<32x8x128xf32, #tpu.memory_space<vmem>>, vector<1x8x128xf32>
    %186 = vector.shape_cast %185 : vector<1x8x128xf32> to vector<8x128xf32>
    %c0_i32_94 = arith.constant 0 : i32
    %187 = vector.broadcast %c0_i32_94 : i32 to vector<8x128xi32>
    %c29 = arith.constant 29 : index
    %c0_95 = arith.constant 0 : index
    %c0_96 = arith.constant 0 : index
    %188 = vector.load %arg1[%c29, %c0_95, %c0_96] : memref<32x8x128xf32, #tpu.memory_space<vmem>>, vector<1x8x128xf32>
    %189 = vector.shape_cast %188 : vector<1x8x128xf32> to vector<8x128xf32>
    %190 = arith.cmpf ogt, %189, %186 : vector<8x128xf32>
    %c1_i32_97 = arith.constant 1 : i32
    %191 = vector.broadcast %c1_i32_97 : i32 to vector<8x128xi32>
    %192 = arith.select %190, %191, %187 : vector<8x128xi1>, vector<8x128xi32>
    %193 = arith.maximumf %186, %189 : vector<8x128xf32>
    %c30 = arith.constant 30 : index
    %c0_98 = arith.constant 0 : index
    %c0_99 = arith.constant 0 : index
    %194 = vector.load %arg1[%c30, %c0_98, %c0_99] : memref<32x8x128xf32, #tpu.memory_space<vmem>>, vector<1x8x128xf32>
    %195 = vector.shape_cast %194 : vector<1x8x128xf32> to vector<8x128xf32>
    %196 = arith.cmpf ogt, %195, %193 : vector<8x128xf32>
    %c2_i32_100 = arith.constant 2 : i32
    %197 = vector.broadcast %c2_i32_100 : i32 to vector<8x128xi32>
    %198 = arith.select %196, %197, %192 : vector<8x128xi1>, vector<8x128xi32>
    %199 = arith.maximumf %193, %195 : vector<8x128xf32>
    %c31 = arith.constant 31 : index
    %c0_101 = arith.constant 0 : index
    %c0_102 = arith.constant 0 : index
    %200 = vector.load %arg1[%c31, %c0_101, %c0_102] : memref<32x8x128xf32, #tpu.memory_space<vmem>>, vector<1x8x128xf32>
    %201 = vector.shape_cast %200 : vector<1x8x128xf32> to vector<8x128xf32>
    %202 = arith.cmpf ogt, %201, %199 : vector<8x128xf32>
    %c3_i32_103 = arith.constant 3 : i32
    %203 = vector.broadcast %c3_i32_103 : i32 to vector<8x128xi32>
    %204 = arith.select %202, %203, %198 : vector<8x128xi1>, vector<8x128xi32>
    %205 = arith.maximumf %199, %201 : vector<8x128xf32>
    %cst_104 = arith.constant 5.000000e-01 : f32
    %206 = vector.broadcast %cst_104 : f32 to vector<8x128xf32>
    %207 = arith.cmpf oge, %205, %206 : vector<8x128xf32>
    %cst_105 = arith.constant dense<true> : vector<8x128xi1>
    %208 = arith.xori %184, %cst_105 : vector<8x128xi1>
    %209 = arith.andi %207, %208 : vector<8x128xi1>
    %210 = arith.select %209, %204, %183 : vector<8x128xi1>, vector<8x128xi32>
    %211 = arith.ori %184, %207 : vector<8x128xi1>
    %212 = arith.extui %211 : vector<8x128xi1> to vector<8x128xi32>
    %c16_i32 = arith.constant 16 : i32
    %213 = vector.broadcast %c16_i32 : i32 to vector<8x128xi32>
    %214 = arith.shli %212, %213 : vector<8x128xi32>
    %215 = arith.ori %214, %210 : vector<8x128xi32>
    %c0_106 = arith.constant 0 : index
    %c0_107 = arith.constant 0 : index
    %216 = vector.load %arg2[%c0_106, %c0_107] : memref<8x128xi32, #tpu.memory_space<vmem>>, vector<8x128xi32>
    tpu.vector_store %arg2[%c0_106, %c0_107], %215 {strides = array<i32>} : memref<8x128xi32, #tpu.memory_space<vmem>>, vector<8x128xi32>,
    return
  }
  func.func @transform_0(%arg0: i32) -> (i32, i32, i32) {
    %c0_i32 = arith.constant 0 : i32
    %c0_i32_0 = arith.constant 0 : i32
    %c0_i32_1 = arith.constant 0 : i32
    return %c0_i32, %arg0, %c0_i32_0 : i32, i32, i32
  }
  func.func @transform_1(%arg0: i32) -> (i32, i32) {
    %c0_i32 = arith.constant 0 : i32
    %c0_i32_0 = arith.constant 0 : i32
    return %arg0, %c0_i32 : i32, i32
  }
}

</mosaic_0001>

<bundles_post_ra>
// kernel: tpu_custom_call.1
= control target key start
LH: loop header
LB: loop body
LE: loop exit
PB: predicated region body
PF: predicated region fallthrough
CT: control target
= control target key end

     0   :  { %6 = vsyncpa [#allocation3], 0  ;;  %s372_s0 = inlined_call_operand.hbm [shape: f32[32,8,128], index: 0, kind: input, shape index: {}]   ;;  %s373_s1 = inlined_call_operand.hbm [shape: s32[8,128], index: 1, kind: output, shape index: {}]  }
   0x1   :  { %7 = vsyncpa [#allocation4], 0  ;;  %s263_s6 = smov [#allocation2]  }
   0x2   :  { %s13_s7 = sshll.u32 %s263_s6, 4  ;;  %s14_s7 = int_to_ptr.vmem [resolvable:$true] %s13_s7 }
   0x3   :  { %s227_s8 = scalar_lea.vmem %s14_s7, 4096  ;;  %p232_p1 = scmp.lt.s32.totalorder %s14_s7, %s14_s7 }
   0x4   :  { %p228_p0 = scmp.ne.s32.totalorder %s14_s7, %s227_s8  ;;  %p233_p2 = scmp.lt.s32.totalorder %s227_s8, %s227_s8 }
   0x6   :  { %p234_p3 = por %p233_p2, %p232_p1 }
   0x8   :  { %p235_p4 = pnand %p234_p3, %p228_p0 }
   0xa   :  { %238 = shalt.err (!%p235_p4)
}
   0xb   :  { %s264_s9 = smov 128   ;;  %s265_s10 = smov 8  }
   0xc   :  { %19 = dma.hbm_to_vmem [thread:$0]  %s372_s0, 4096, %s14_s7, [#allocation3], %s264_s9, %s264_s9, %s265_s10  }
   0xd   :  { %259 = dma.done.wait [#allocation3], 4096  }
   0xe   :  { %260 = vsyncadd [#allocation3], 4294963200  ;;  %v23_v0 = vld [vmem:[#allocation2] sm:$0xff]  ;;  %v25_v1 = vld [vmem:[#allocation2 + $0x8] sm:$0xff]  ;;  %v266_v6 = vmov 0   ;;  %vm267_vm10 = vmmov 1  }
   0xf   :  { %v30_v2 = vld [vmem:[#allocation2 + $0x10] sm:$0xff]  ;;  %vm26_vm0 = vcmp.gt.f32.partialorder %v25_v1, %v23_v0  ;;  %v28_v3 = vmax.f32 %v23_v0, %v25_v1  ;;  %v41_v4 = vld [vmem:[#allocation2 + $0x20] sm:$0xff]  ;;  %v43_v5 = vld [vmem:[#allocation2 + $0x28] sm:$0xff]  ;;  %s268_s0 = smov [#allocation5]  }
  0x10   :  { %v27_v7 = vsel %vm26_vm0, 1, %v266_v6  ;;  %v35_v8 = vld [vmem:[#allocation2 + $0x18] sm:$0xff]  ;;  %vm44_vm1 = vcmp.gt.f32.partialorder %v43_v5, %v41_v4  ;;  %v46_v9 = vmax.f32 %v41_v4, %v43_v5  ;;  %v48_v10 = vld [vmem:[#allocation2 + $0x30] sm:$0xff]  ;;  %v63_v14 = vld [vmem:[#allocation2 + $0x40] sm:$0xff]  ;;  %s204_s13 = sshll.u32 %s268_s0, 4  ;;  %s205_s13 = int_to_ptr.vmem [resolvable:$true] %s204_s13 }
  0x11   :  { %vm31_vm2 = vcmp.gt.f32.partialorder %v30_v2, %v28_v3  ;;  %v33_v11 = vmax.f32 %v28_v3, %v30_v2  ;;  %v45_v12 = vsel %vm44_vm1, 1, %v266_v6  ;;  %v53_v13 = vld [vmem:[#allocation2 + $0x38] sm:$0xff]  ;;  %v65_v15 = vld [vmem:[#allocation2 + $0x48] sm:$0xff]  ;;  %v85_v18 = vld [vmem:[#allocation2 + $0x60] sm:$0xff]  ;;  %s239_s14 = scalar_lea.vmem %s205_s13, 128  ;;  %p244_p6 = scmp.lt.s32.totalorder %s205_s13, %s205_s13 }
  0x12   :  { %v32_v16 = vsel %vm31_vm2, 2, %v27_v7  ;;  %vm49_vm3 = vcmp.gt.f32.partialorder %v48_v10, %v46_v9  ;;  %v51_v17 = vmax.f32 %v46_v9, %v48_v10  ;;  %vm66_vm4 = vcmp.gt.f32.partialorder %v65_v15, %v63_v14  ;;  %v87_v19 = vld [vmem:[#allocation2 + $0x68] sm:$0xff]  ;;  %v70_v23 = vld [vmem:[#allocation2 + $0x50] sm:$0xff]  ;;  %v75_v30 = vld [vmem:[#allocation2 + $0x58] sm:$0xff]  ;;  %p240_p5 = scmp.ne.s32.totalorder %s205_s13, %s239_s14  ;;  %p245_p7 = scmp.lt.s32.totalorder %s239_s14, %s239_s14 }
  0x13   :  { %vm36_vm5 = vcmp.gt.f32.partialorder %v35_v8, %v33_v11  ;;  %v38_v20 = vmax.f32 %v33_v11, %v35_v8  ;;  %v50_v21 = vsel %vm49_vm3, 2, %v45_v12  ;;  %v67_v22 = vsel %vm66_vm4, 1, %v266_v6  ;;  %v92_v27 = vld [vmem:[#allocation2 + $0x70] sm:$0xff]  ;;  %v97_v32 = vld [vmem:[#allocation2 + $0x78] sm:$0xff]  ;;  %v107_v37 = vld [vmem:[#allocation2 + $0x80] sm:$0xff] }
  0x14   :  { %v37_v24 = vsel %vm36_vm5, 3, %v32_v16  ;;  %vm54_vm6 = vcmp.gt.f32.partialorder %v53_v13, %v51_v17  ;;  %v56_v25 = vmax.f32 %v51_v17, %v53_v13  ;;  %v68_v26 = vmax.f32 %v63_v14, %v65_v15  ;;  %v109_v38 = vld [vmem:[#allocation2 + $0x88] sm:$0xff]  ;;  %v129_v43 = vld [vmem:[#allocation2 + $0xa0] sm:$0xff]  ;;  %v114_v49 = vld [vmem:[#allocation2 + $0x90] sm:$0xff]  ;;  %p246_p8 = por %p245_p7, %p244_p6 }
  0x15   :  { %vm285_vm7 = vcmp.ge.f32.partialorder %v38_v20, 0.5  ;;  %v55_v29 = vsel %vm54_vm6, 3, %v50_v21  ;;  %vm88_vm8 = vcmp.gt.f32.partialorder %v87_v19, %v85_v18  ;;  %v90_v31 = vmax.f32 %v85_v18, %v87_v19  ;;  %v131_v44 = vld [vmem:[#allocation2 + $0xa8] sm:$0xff]  ;;  %v136_v52 = vld [vmem:[#allocation2 + $0xb0] sm:$0xff]  ;;  %v151_v53 = vld [vmem:[#allocation2 + $0xc0] sm:$0xff] }
  0x16   :  { %vm289_vm9 = vcmp.ge.f32.partialorder %v56_v25, 0.5  ;;  %vm296_vm11 = vmxor %vm285_vm7, %vm267_vm10  ;;  %vm71_vm12 = vcmp.gt.f32.partialorder %v70_v23, %v68_v26  ;;  %v73_v35 = vmax.f32 %v68_v26, %v70_v23  ;;  %v89_v36 = vsel %vm88_vm8, 1, %v266_v6  ;;  %v153_v54 = vld [vmem:[#allocation2 + $0xc8] sm:$0xff]  ;;  %v119_v56 = vld [vmem:[#allocation2 + $0x98] sm:$0xff]  ;;  %p247_p9 = pnand %p246_p8, %p240_p5 }
  0x17   :  { %vm59_vm13 = vmand %vm289_vm9, %vm296_vm11  ;;  %v72_v39 = vsel %vm71_vm12, 2, %v67_v22  ;;  %vm93_vm14 = vcmp.gt.f32.partialorder %v92_v27, %v90_v31  ;;  %v95_v40 = vmax.f32 %v90_v31, %v92_v27  ;;  %vm110_vm15 = vcmp.gt.f32.partialorder %v109_v38, %v107_v37  ;;  %v141_v63 = vld [vmem:[#allocation2 + $0xb8] sm:$0xff]  ;;  %v158_v3 = vld [vmem:[#allocation2 + $0xd0] sm:$0xff] }
  0x18   :  { %vm61_vm0 = vmor %vm285_vm7, %vm289_vm9  ;;  %vm76_vm1 = vcmp.gt.f32.partialorder %v75_v30, %v73_v35  ;;  %v78_v41 = vmax.f32 %v73_v35, %v75_v30  ;;  %v94_v42 = vsel %vm93_vm14, 2, %v89_v36  ;;  %v60_v45 = vsel %vm59_vm13, %v55_v29, %v37_v24  ;;  %v173_v8 = vld [vmem:[#allocation2 + $0xe0] sm:$0xff]  ;;  %v175_v9 = vld [vmem:[#allocation2 + $0xe8] sm:$0xff] }
  0x19   :  { %v77_v46 = vsel %vm76_vm1, 3, %v72_v39  ;;  %vm315_vm2 = vmxor %vm61_vm0, %vm267_vm10  ;;  %vm98_vm3 = vcmp.gt.f32.partialorder %v97_v32, %v95_v40  ;;  %v100_v48 = vmax.f32 %v95_v40, %v97_v32  ;;  %v111_v50 = vsel %vm110_vm15, 1, %v266_v6  ;;  %v163_v12 = vld [vmem:[#allocation2 + $0xd8] sm:$0xff]  ;;  %v180_v15 = vld [vmem:[#allocation2 + $0xf0] sm:$0xff] }
  0x1a   :  { %vm79_vm4 = vcmp.ge.f32.partialorder %v78_v41, 0.5  ;;  %v112_v51 = vmax.f32 %v107_v37, %v109_v38  ;;  %vm132_vm5 = vcmp.gt.f32.partialorder %v131_v44, %v129_v43  ;;  %v99_v55 = vsel %vm98_vm3, 3, %v94_v42  ;;  %v185_v23 = vld [vmem:[#allocation2 + $0xf8] sm:$0xff] }
  0x1b   :  { %vm81_vm6 = vmand %vm79_vm4, %vm315_vm2  ;;  %v133_v57 = vsel %vm132_vm5, 1, %v266_v6  ;;  %v134_v58 = vmax.f32 %v129_v43, %v131_v44  ;;  %vm154_vm8 = vcmp.gt.f32.partialorder %v153_v54, %v151_v53  ;;  %vm332_vm12 = vcmp.ge.f32.partialorder %v100_v48, 0.5 }
  0x1c   :  { %v82_v59 = vsel %vm81_vm6, %v77_v46, %v60_v45  ;;  %vm328_vm11 = vmor %vm61_vm0, %vm79_vm4  ;;  %vm115_vm13 = vcmp.gt.f32.partialorder %v114_v49, %v112_v51  ;;  %v117_v62 = vmax.f32 %v112_v51, %v114_v49  ;;  %v156_v2 = vmax.f32 %v151_v53, %v153_v54 }
  0x1d   :  { %vm102_vm14 = vmxor %vm328_vm11, %vm267_vm10  ;;  %v116_v0 = vsel %vm115_vm13, 2, %v111_v50  ;;  %vm137_vm15 = vcmp.gt.f32.partialorder %v136_v52, %v134_v58  ;;  %v139_v1 = vmax.f32 %v134_v58, %v136_v52  ;;  %v155_v7 = vsel %vm154_vm8, 1, %v266_v6 }
  0x1e   :  { %vm103_vm7 = vmand %vm332_vm12, %vm102_vm14  ;;  %vm120_vm9 = vcmp.gt.f32.partialorder %v119_v56, %v117_v62  ;;  %v122_v4 = vmax.f32 %v117_v62, %v119_v56  ;;  %v138_v5 = vsel %vm137_vm15, 2, %v133_v57  ;;  %vm176_vm2 = vcmp.gt.f32.partialorder %v175_v9, %v173_v8 }
  0x1f   :  { %v104_v10 = vsel %vm103_vm7, %v99_v55, %v82_v59  ;;  %vm105_vm0 = vmor %vm328_vm11, %vm332_vm12  ;;  %vm142_vm1 = vcmp.gt.f32.partialorder %v141_v63, %v139_v1  ;;  %v144_v11 = vmax.f32 %v139_v1, %v141_v63  ;;  %v121_v13 = vsel %vm120_vm9, 3, %v116_v0 }
  0x20   :  { %vm123_vm3 = vcmp.ge.f32.partialorder %v122_v4, 0.5  ;;  %vm124_vm4 = vmxor %vm105_vm0, %vm267_vm10  ;;  %vm159_vm5 = vcmp.gt.f32.partialorder %v158_v3, %v156_v2  ;;  %v161_v14 = vmax.f32 %v156_v2, %v158_v3  ;;  %v143_v16 = vsel %vm142_vm1, 3, %v138_v5 }
  0x21   :  { %vm125_vm6 = vmand %vm123_vm3, %vm124_vm4  ;;  %v178_v17 = vmax.f32 %v173_v8, %v175_v9  ;;  %vm352_vm13 = vcmp.ge.f32.partialorder %v144_v11, 0.5  ;;  %v160_v20 = vsel %vm159_vm5, 2, %v155_v7  ;;  %v177_v22 = vsel %vm176_vm2, 1, %v266_v6 }
  0x22   :  { %vm348_vm8 = vmor %vm105_vm0, %vm123_vm3  ;;  %v166_v21 = vmax.f32 %v161_v14, %v163_v12  ;;  %v126_v24 = vsel %vm125_vm6, %v121_v13, %v104_v10  ;;  %vm164_vm12 = vcmp.gt.f32.partialorder %v163_v12, %v161_v14 }
  0x23   :  { %vm146_vm11 = vmxor %vm348_vm8, %vm267_vm10  ;;  %vm181_vm14 = vcmp.gt.f32.partialorder %v180_v15, %v178_v17  ;;  %v183_v25 = vmax.f32 %v178_v17, %v180_v15  ;;  %v165_v28 = vsel %vm164_vm12, 3, %v160_v20 }
  0x24   :  { %vm147_vm15 = vmand %vm352_vm13, %vm146_vm11  ;;  %vm167_vm9 = vcmp.ge.f32.partialorder %v166_v21, 0.5  ;;  %v182_v29 = vsel %vm181_vm14, 2, %v177_v22 }
  0x25   :  { %vm149_vm7 = vmor %vm348_vm8, %vm352_vm13  ;;  %v188_v26 = vmax.f32 %v183_v25, %v185_v23  ;;  %v148_v27 = vsel %vm147_vm15, %v143_v16, %v126_v24  ;;  %vm186_vm1 = vcmp.gt.f32.partialorder %v185_v23, %v183_v25 }
  0x26   :  { %vm168_vm0 = vmxor %vm149_vm7, %vm267_vm10  ;;  %v187_v31 = vsel %vm186_vm1, 3, %v182_v29 }
  0x27   :  { %vm169_vm2 = vmand %vm167_vm9, %vm168_vm0  ;;  %vm189_vm4 = vcmp.ge.f32.partialorder %v188_v26, 0.5 }
  0x28   :  { %vm171_vm3 = vmor %vm149_vm7, %vm167_vm9  ;;  %v170_v30 = vsel %vm169_vm2, %v165_v28, %v148_v27 }
  0x29   :  { %vm190_vm5 = vmxor %vm171_vm3, %vm267_vm10 }
  0x2a   :  { %vm191_vm6 = vmand %vm189_vm4, %vm190_vm5 }
  0x2b   :  { %vm193_vm11 = vmor %vm171_vm3, %vm189_vm4  ;;  %v192_v32 = vsel %vm191_vm6, %v187_v31, %v170_v30 }
  0x2c   :  { %v194_v33 = vsel %vm193_vm11, 1, %v266_v6 }
  0x2d   :  { %v195_v34 = vshll.u32 %v194_v33, 16 }
  0x2f   :  { %v196_v35 = vor.u32 %v195_v34, %v192_v32 }
  0x31   :  { %197 = vst [vmem:[#allocation5] sm:$0xff] %v196_v35 }
  0x32   :  { %250 = shalt.err (!%p247_p9)
}
  0x33   :  { %207 = dma.vmem_to_hbm [thread:$0]  %s205_s13, 128, %s373_s1, [#allocation4]  }
  0x34   :  { %261 = dma.done.wait [#allocation4], 128  }
  0x35   :  { %262 = vsyncadd [#allocation4], 4294967168 }
  0x36   :  { %211 = vsyncpa [#allocation3], 1 }
  0x37   :  { %212 = vsyncpa [#allocation4], 1 }

</bundles_post_ra>
